<compile_context>
chip_gen: v5e
topology: v5e:2x2
jax: 0.10.0
libtpu: 0.0.40
codegen_flags: <defaults>
</compile_context>

<pallas_src>
import jax
import jax.numpy as jnp
from jax.experimental import pallas as pl
from jax.experimental.pallas import tpu as pltpu


def _round_up(x: int, m: int) -> int:
    return pl.cdiv(x, m) * m


def _make_mlp_kernel(layer_shapes, activation_fn: str):
    """Build a fused MLP kernel.

    Kernel args: (x_ref, param_slab_ref, out_ref).
      x_ref:    (input_dim, tb)  activations, batch on lanes.
      slab_ref: (R, C) packed params; layer i occupies rows
                [row_i, row_i + out_i), cols [0, in_i) = W_i (PyTorch (out,in)),
                col in_i = bias_i.
      out_ref:  (out_dim, tb) lane-dense output block.
    Activation after every layer except the last (matches `self.layers.pop()`).
    """
    if activation_fn == "relu":
        act = lambda h: jnp.maximum(h, 0.0)
    elif activation_fn == "tanh":
        act = jnp.tanh
    else:
        raise ValueError("Supported activation functions: 'relu', 'tanh'")

    num_layers = len(layer_shapes)

    def kernel(x_ref, p_ref, out_ref):
        p = p_ref[...]                       # whole (tiny) param slab, loaded once
        h = x_ref[...]                       # (in0, tb) f32
        row = 0
        for i, (out_i, in_i) in enumerate(layer_shapes):
            w = p[row:row + out_i, :in_i]                              # (out_i, in_i)
            b = p[row:row + out_i, in_i:in_i + 1].astype(jnp.float32)  # (out_i, 1)
            # MXU matmul, f32 accumulation; operands in param dtype (f32 or bf16).
            h = jnp.dot(w, h.astype(w.dtype),
                        preferred_element_type=jnp.float32) + b
            if i < num_layers - 1:
                h = act(h)
            row += out_i
        out_ref[...] = h.astype(out_ref.dtype)

    return kernel


def _pack_params(weights, biases, param_dtype):
    """Pack all (out,in) weights and (out,) biases into one (R, C) slab."""
    layer_shapes = tuple((int(w.shape[0]), int(w.shape[1])) for w in weights)
    rows = sum(o for o, _ in layer_shapes)
    cols = max(i + 1 for _, i in layer_shapes)
    # Align to sublane/lane granules for a clean single DMA (slab is tiny).
    rows_p = _round_up(rows, 8)
    cols_p = _round_up(cols, 128)
    slab = jnp.zeros((rows_p, cols_p), param_dtype)
    row = 0
    for w, b in zip(weights, biases):
        out_i, in_i = int(w.shape[0]), int(w.shape[1])
        slab = slab.at[row:row + out_i, :in_i].set(w.astype(param_dtype))
        slab = slab.at[row:row + out_i, in_i].set(b.astype(param_dtype))
        row += out_i
    return slab, layer_shapes


def value_network_forward(x, weights, biases, activation_fn="relu", *,
                          batch_tile=512, param_dtype=jnp.float32):
    """ValueNetwork forward pass with one fused Pallas kernel.

    Args:
      x:        (B, input_dim) float32 observations.
      weights:  list of (out_i, in_i) weight matrices (PyTorch nn.Linear layout).
      biases:   list of (out_i,) bias vectors.
      activation_fn: "relu" or "tanh".
      batch_tile:   batch rows per grid step (rounded to a multiple of 128).
      param_dtype:  storage/compute dtype of the weights (f32 or bf16);
                    accumulation is always f32.
    Returns:
      (B, 1) float32 values.
    """
    if activation_fn not in ("relu", "tanh"):
        raise ValueError("Supported activation functions: 'relu', 'tanh'")
    B, D = x.shape
    num_layers = len(weights)
    assert len(biases) == num_layers

    # --- tile selection: big, lane-aligned, and (when possible) >= 2 grid steps
    # so the parallel axis can be sharded across v7x's two TensorCores.
    tb = min(max(int(batch_tile), 1), _round_up(B, 128))
    tb = _round_up(tb, 128)
    if _round_up(B, 128) // tb < 2 and tb > 128:
        tb = max(128, _round_up(tb // 2, 128))
    B_pad = _round_up(B, tb)
    grid = B_pad // tb

    # --- pack params into one constant slab (single, resident DMA channel).
    slab, layer_shapes = _pack_params(weights, biases, param_dtype)
    out_dim = layer_shapes[-1][0]   # == 1 for the value head

    # --- batch-on-lanes input: (D, B_pad).
    x_t = jnp.transpose(x.astype(jnp.float32))            # (D, B)
    if B_pad != B:
        x_t = jnp.pad(x_t, ((0, 0), (0, B_pad - B)))

    kernel = _make_mlp_kernel(layer_shapes, activation_fn)

    out_t = pl.pallas_call(
        kernel,
        out_shape=jax.ShapeDtypeStruct((out_dim, B_pad), jnp.float32),
        grid_spec=pltpu.PrefetchScalarGridSpec(
            num_scalar_prefetch=0,
            grid=(grid,),
            in_specs=[
                pl.BlockSpec((D, tb), lambda i: (0, i)),              # x tile
                pl.BlockSpec(slab.shape, lambda i: (0, 0)),           # const params
            ],
            out_specs=pl.BlockSpec((out_dim, tb), lambda i: (0, i)),  # lane-dense
        ),
        compiler_params=pltpu.CompilerParams(
            dimension_semantics=("parallel",),
        ),
    )(x_t, slab)

    return jnp.transpose(out_t[:, :B])                    # (B, out_dim)


def init_value_network_params(key, input_dim, hidden_dims):
    """nn.Linear-style init: U(-1/sqrt(fan_in), +1/sqrt(fan_in)).

    Weights returned in PyTorch (out, in) layout, biases as (out,).
    """
    if input_dim < 1 or (hidden_dims and any(h < 1 for h in hidden_dims)):
        raise ValueError("All dimension values must be >= 1")
    layer_sizes = [input_dim] + (list(hidden_dims) if hidden_dims else []) + [1]
    weights, biases = [], []
    for i in range(len(layer_sizes) - 1):
        fan_in, fan_out = layer_sizes[i], layer_sizes[i + 1]
        key, kw, kb = jax.random.split(key, 3)
        bound = 1.0 / jnp.sqrt(jnp.float32(fan_in))
        w = jax.random.uniform(kw, (fan_out, fan_in), jnp.float32, -bound, bound)
        b = jax.random.uniform(kb, (fan_out,), jnp.float32, -bound, bound)
        weights.append(w)
        biases.append(b)
    return weights, biases


def value_network_reference(x, weights, biases, activation_fn="relu",
                            param_dtype=jnp.float32):
    """Pure-JAX reference (same dtype policy as the kernel) for checking."""
    act = (lambda h: jnp.maximum(h, 0.0)) if activation_fn == "relu" else jnp.tanh
    h = x.astype(jnp.float32)
    n = len(weights)
    for i, (w, b) in enumerate(zip(weights, biases)):
        wp = w.astype(param_dtype)
        bp = b.astype(param_dtype).astype(jnp.float32)
        h = jnp.dot(h.astype(param_dtype), wp.T,
                    preferred_element_type=jnp.float32) + bp
        if i < n - 1:
            h = act(h)
    return h


if __name__ == "__main__":
    key = jax.random.PRNGKey(0)

    input_dim = 16
    hidden_dims = [64, 64]

    key, kx1, kx2, kx3 = jax.random.split(key, 4)
    weights, biases = init_value_network_params(key, input_dim, hidden_dims)

    # Case A: lane-aligned batch, relu, f32 params (strict check).
    xA = jax.random.normal(kx1, (256, input_dim), jnp.float32)
    outA = jax.block_until_ready(value_network_forward(xA, weights, biases, "relu"))
    refA = value_network_reference(xA, weights, biases, "relu")
    assert outA.shape == (256, 1), outA.shape
    assert jnp.allclose(outA, refA, atol=1e-4, rtol=1e-4)

    # Case B: batch not divisible by 128 (pad + slice path), tanh activation.
    xB = jax.random.normal(kx2, (130, input_dim), jnp.float32)
    outB = jax.block_until_ready(value_network_forward(xB, weights, biases, "tanh"))
    refB = value_network_reference(xB, weights, biases, "tanh")
    assert outB.shape == (130, 1), outB.shape
    assert jnp.allclose(outB, refB, atol=1e-4, rtol=1e-4)

    # Case C: bf16 parameter storage (native MXU operands, f32 accumulation).
    outC = jax.block_until_ready(
        value_network_forward(xA, weights, biases, "relu",
                              param_dtype=jnp.bfloat16))
    refC = value_network_reference(xA, weights, biases, "relu",
                                   param_dtype=jnp.bfloat16)
    assert outC.shape == (256, 1), outC.shape
    assert jnp.allclose(outC, refC, atol=5e-2, rtol=5e-2)

    # Case D: no hidden layers (single Linear, matches `hidden_dims=None`).
    w1, b1 = init_value_network_params(kx3, input_dim, [])
    outD = jax.block_until_ready(value_network_forward(xA, w1, b1, "relu"))
    refD = value_network_reference(xA, w1, b1, "relu")
    assert outD.shape == (256, 1), outD.shape
    assert jnp.allclose(outD, refD, atol=1e-4, rtol=1e-4)

    print("KERNEL_OK")
</pallas_src>

<mosaic_0001>
module attributes {stable_mosaic.version = 11 : i64} {
  func.func @kernel(%arg0: i32, %arg1: memref<16x128xf32, #tpu.memory_space<vmem>>, %arg2: memref<136x128xf32, #tpu.memory_space<vmem>>, %arg3: memref<1x128xf32, #tpu.memory_space<vmem>>) attributes {dimension_semantics = [#tpu.dimension_semantics<parallel>], iteration_bounds = array<i64: 2>, scalar_prefetch = 0 : i64, scratch_operands = 0 : i64, tpu.core_type = #tpu.core_type<tc>, window_params = [{transform_indices = @transform_0, window_bounds = array<i64: 16, 128>}, {pipeline_mode = #tpu.pipeline_mode<synchronous>, transform_indices = @transform_1, window_bounds = array<i64: 136, 128>}, {transform_indices = @transform_2, window_bounds = array<i64: 1, 128>}]} {
    %c0 = arith.constant 0 : index
    %c0_0 = arith.constant 0 : index
    %0 = vector.load %arg2[%c0, %c0_0] : memref<136x128xf32, #tpu.memory_space<vmem>>, vector<136x128xf32>
    %c0_1 = arith.constant 0 : index
    %c0_2 = arith.constant 0 : index
    %1 = vector.load %arg1[%c0_1, %c0_2] : memref<16x128xf32, #tpu.memory_space<vmem>>, vector<16x128xf32>
    %2 = vector.extract_strided_slice %0 {offsets = [0, 0], sizes = [64, 16], strides = [1, 1]} : vector<136x128xf32> to vector<64x16xf32>
    %3 = vector.extract_strided_slice %0 {offsets = [0, 16], sizes = [64, 1], strides = [1, 1]} : vector<136x128xf32> to vector<64x1xf32>
    %cst = arith.constant dense<0.000000e+00> : vector<64x128xf32>
    %4 = tpu.matmul %2, %1, %cst {dimension_numbers = #tpu.dot_dimension_numbers<[1], [0], [0], [1], [0, 0, 1, 1], [], []>} : vector<64x16xf32>, vector<16x128xf32>, vector<64x128xf32> -> vector<64x128xf32>
    %5 = vector.broadcast %3 : vector<64x1xf32> to vector<64x128xf32>
    %6 = arith.addf %4, %5 : vector<64x128xf32>
    %cst_3 = arith.constant 0.000000e+00 : f32
    %7 = vector.broadcast %cst_3 : f32 to vector<64x128xf32>
    %8 = arith.maximumf %6, %7 : vector<64x128xf32>
    %9 = vector.extract_strided_slice %0 {offsets = [64, 0], sizes = [64, 64], strides = [1, 1]} : vector<136x128xf32> to vector<64x64xf32>
    %10 = vector.extract_strided_slice %0 {offsets = [64, 64], sizes = [64, 1], strides = [1, 1]} : vector<136x128xf32> to vector<64x1xf32>
    %cst_4 = arith.constant dense<0.000000e+00> : vector<64x128xf32>
    %11 = tpu.matmul %9, %8, %cst_4 {dimension_numbers = #tpu.dot_dimension_numbers<[1], [0], [0], [1], [0, 0, 1, 1], [], []>} : vector<64x64xf32>, vector<64x128xf32>, vector<64x128xf32> -> vector<64x128xf32>
    %12 = vector.broadcast %10 : vector<64x1xf32> to vector<64x128xf32>
    %13 = arith.addf %11, %12 : vector<64x128xf32>
    %cst_5 = arith.constant 0.000000e+00 : f32
    %14 = vector.broadcast %cst_5 : f32 to vector<64x128xf32>
    %15 = arith.maximumf %13, %14 : vector<64x128xf32>
    %16 = vector.extract_strided_slice %0 {offsets = [128, 0], sizes = [1, 64], strides = [1, 1]} : vector<136x128xf32> to vector<1x64xf32>
    %17 = vector.extract_strided_slice %0 {offsets = [128, 64], sizes = [1, 1], strides = [1, 1]} : vector<136x128xf32> to vector<1x1xf32>
    %cst_6 = arith.constant dense<0.000000e+00> : vector<1x128xf32>
    %18 = tpu.matmul %16, %15, %cst_6 {dimension_numbers = #tpu.dot_dimension_numbers<[1], [0], [0], [1], [0, 0, 1, 1], [], []>} : vector<1x64xf32>, vector<64x128xf32>, vector<1x128xf32> -> vector<1x128xf32>
    %19 = vector.broadcast %17 : vector<1x1xf32> to vector<1x128xf32>
    %20 = arith.addf %18, %19 : vector<1x128xf32>
    %c0_7 = arith.constant 0 : index
    %c0_8 = arith.constant 0 : index
    %21 = vector.load %arg3[%c0_7, %c0_8] : memref<1x128xf32, #tpu.memory_space<vmem>>, vector<1x128xf32>
    tpu.vector_store %arg3[%c0_7, %c0_8], %20 {strides = array<i32>} : memref<1x128xf32, #tpu.memory_space<vmem>>, vector<1x128xf32>,
    return
  }
  func.func @transform_0(%arg0: i32) -> (i32, i32) {
    %c0_i32 = arith.constant 0 : i32
    %c0_i32_0 = arith.constant 0 : i32
    return %c0_i32, %arg0 : i32, i32
  }
  func.func @transform_1(%arg0: i32) -> (i32, i32) {
    %c0_i32 = arith.constant 0 : i32
    %c0_i32_0 = arith.constant 0 : i32
    %c0_i32_1 = arith.constant 0 : i32
    return %c0_i32, %c0_i32_0 : i32, i32
  }
  func.func @transform_2(%arg0: i32) -> (i32, i32) {
    %c0_i32 = arith.constant 0 : i32
    %c0_i32_0 = arith.constant 0 : i32
    return %c0_i32, %arg0 : i32, i32
  }
}

</mosaic_0001>

<bundles_post_ra>
// kernel: tpu_custom_call.1
= control target key start
LH: loop header
LB: loop body
LE: loop exit
PB: predicated region body
PF: predicated region fallthrough
CT: control target
= control target key end

     0   :  { %7 = vsyncpa [#allocation3], 0  ;;  %s953_s0 = inlined_call_operand.hbm [shape: f32[16,256], index: 0, kind: input, shape index: {}]   ;;  %s954_s1 = inlined_call_operand.hbm [shape: f32[136,128], index: 1, kind: input, shape index: {}]   ;;  %s955_s2 = inlined_call_operand.hbm [shape: f32[1,256], index: 2, kind: output, shape index: {}]  }
   0x1   :  { %9 = vsyncpa [#allocation3 + $0x1], 0 }
   0x2   :  { %10 = vsyncpa [#allocation6], 0 }
   0x3   :  { %11 = vsyncpa [#allocation4], 0 }
   0x4   :  { %13 = vsyncpa [#allocation4 + $0x1], 0  ;;  %s786_s9 = smov 0   ;;  %s788_s10 = smov 0  }
   0x5   :  { %s790_s11 = smov 0   ;;  %s792_s12 = smov 0  }
   0x6 LB: > { %s807_s13 = sadd.s32 4294967295, %s763_s12   ;;  %s527_s14 = sadd.s32 4294967294, %s763_s12   ;;  %s763_s12 = sphi %s792_s12, %s965_s12   ;;  %s759_s11 = sphi %s790_s11, %s964_s11   ;;  %s755_s10 = sphi %s788_s10, %s963_s10   ;;  %s751_s9 = sphi %s786_s9, %s962_s9  }
   0x7   : > { %p39_p0 = scmp.ne.s32.totalorder %s755_s10, %s751_s9  ;;  %p40_p1 = scmp.eq.s32.totalorder %s807_s13, 0 }
   0x8   : > { %p84_p2 = scmp.eq.s32.totalorder %s807_s13, 1  ;;  %p90_p3 = scmp.eq.s32.totalorder %s527_s14, 1 }
   0x9   : > { %p816_p4 = por %p40_p1, %p39_p0  ;;  %p528_p5 = scmp.ge.s32.totalorder %s763_s12, 1 }
   0xa   : > { %p821_p6 = por %p90_p3, %p39_p0  ;;  %p97_p7 = scmp.lt.s32.totalorder %s763_s12, 3 }
   0xb   : > { %s108_s19 = sshll.u32 %s954_s1, 4  ;;  %s765_s21 = smov [#allocation5]   ;;  %s109_s19 = int_to_ptr.hbm [resolvable:$true] %s108_s19 }
   0xc   : > { %p829_p8 = pnand %p528_p5, %p97_p7  ;;  %s110_s22 = sshll.u32 %s765_s21, 4  ;;  %s111_s22 = int_to_ptr.vmem [resolvable:$true] %s110_s22 }
   0xd   : > { %s839_s23 = sadd.s32 1, %s763_s12   ;;  %s766_s24 = smov 128  }
   0xe   : > { %p573_p9 = pneg %p829_p8  ;;  %s767_s25 = smov 8  }
   0xf   : > { %s23_s26 = ssub.s32 %s763_s12, %s839_s23  ;;  %s26_s27 = sadd.s32 1, %s759_s11 }
  0x10   : > { %p574_p10 = pnand %p573_p9, %p40_p1  ;;  %p24_p12 = scmp.eq.s32.totalorder %s23_s26, 0 }
  0x11   : > { %p33_p13 = scmp.ne.s32.totalorder %s759_s11, %s755_s10  ;;  %p34_p0 = scmp.eq.s32.totalorder %s763_s12, 0 }
  0x12   : > { %576 = dma.hbm_to_vmem [thread:$0]  (!%p574_p10), %s109_s19, 2176, %s111_s22, [#allocation6], %s766_s24, %s766_s24, %s767_s25  }
  0x13   : > { %p586_p3 = scmp.lt.s32.totalorder %s763_s12, 2  ;;  %p35_p5 = por %p34_p0, %p33_p13 }
  0x14   : > { %s852_s28 = scalar_select %p24_p12, %s759_s11, %s26_s27  }
  0x15   : > { %p856_p7 = por %p84_p2, %p33_p13  ;;  %s124_s30 = sand.u32 1, %s759_s11  }
  0x16   : > { %s532_s3 = sshll.u32 %s763_s12, 3  ;;  %s531_s4 = sshll.u32 %s124_s30, 4 }
  0x17   : > { %s132_s7 = scalar_lea.hbm %s953_s0, %s532_s3  ;;  %s128_s14 = scalar_lea.vmem [#allocation2], %s531_s4 }
  0x18   : > { %s133_s8 = sshll.u32 %s132_s7, 4  ;;  %s135_s17 = sshll.u32 %s128_s14, 4  ;;  %s134_s8 = int_to_ptr.hbm [resolvable:$true] %s133_s8  ;;  %s136_s17 = int_to_ptr.vmem [resolvable:$true] %s135_s17 }
  0x19   : > { %p867_p9 = pnand %p586_p3, %p35_p5  ;;  %s125_s19 = scalar_lea.sflag [#allocation3], %s124_s30 }
  0x1a   : > { %s663_s21 = sshra.s32 %s134_s8, 4  ;;  %s670_s3 = scalar_lea.hbm %s953_s0, 32  ;;  %s664_s21 = int_to_ptr.hbm [resolvable:$true] %s663_s21 }
  0x1b   : > { %s665_s22 = scalar_lea.hbm %s664_s21, 16  ;;  %p667_p10 = pneg %p867_p9 }
  0x1c   : > { %p666_p2 = scmp.ne.s32.totalorder %s664_s21, %s665_s22  ;;  %p671_p0 = scmp.lt.s32.totalorder %s664_s21, %s953_s0 }
  0x1d   : > { %p672_p3 = scmp.lt.s32.totalorder %s670_s3, %s665_s22 }
  0x1e   : > { %p668_p12 = pnand %p667_p10, %p666_p2 }
  0x1f   : > { %p673_p5 = por %p672_p3, %p671_p0 }
  0x20   : > { %p669_p13 = pneg %p668_p12 }
  0x22   : > { %p674_p11 = pnand %p673_p5, %p669_p13 }
  0x24   : > { %677 = shalt.err (!%p674_p11)
}
  0x25   : > { %s768_s30 = smov 256   ;;  %147 = sbr.rel (%p829_p8) target bundleno = 533 (0x215), region = 28 }
  0x26   : > { %580 = dma.hbm_to_vmem [thread:$0]  (!%p867_p9), %s134_s8, 256, %s136_s17, %s125_s19, %s768_s30, %s766_s24, %s767_s25  }
  0x27   : > { %s886_s6 = sand.u32 (!%p829_p8), 1, %s755_s10  }
  0x28   : > { %s534_s7 = sshll.u32 (!%p829_p8), %s886_s6, 4  ;;  %s150_s14 = scalar_lea.sflag (!%p829_p8), [#allocation3], %s886_s6 }
  0x29   : > { %s153_s21 = scalar_lea.vmem (!%p829_p8), [#allocation2], %s534_s7 }
  0x2a   : > { %738 = dma.done.wait (%p816_p4), %s150_s14, 256  }
  0x2b   : > { %740 = vsyncadd (%p816_p4), %s150_s14, 4294967040 }
  0x2c   : > { %742 = dma.done.wait (%p40_p1), [#allocation6], 2176  }
  0x2d   : > { %744 = vsyncadd (%p40_p1), [#allocation6], 4294965120  ;;  %v769_v0 = vmov 16   ;;  %v197_v1 = vld [vmem:[%s153_s21 + $0x8] sm:$0xff]  ;;  %v196_v3 = vld [vmem:[%s153_s21] sm:$0xff]  ;;  %vm238_vm0 = vcmask 130048   ;;  %s447_s24 = scalar_lea.hbm %s955_s2, %s807_s13 }
  0x2e   : > { %628 = vset.pattern.permute.xlu1 %v769_v0  ;;  %627 = vset.pattern.permute.xlu0 %v769_v0  ;;  %v184_v2 = vld [vmem:[#allocation5 + $0x28] sm:$0xff]  ;;  %v179_v4 = vld [vmem:[#allocation5] sm:$0xff]  ;;  %v186_v5 = vld [vmem:[#allocation5 + $0x38] sm:$0xff]  ;;  %v770_v24 = vmov 64   ;;  %vm344_vm1 = vcmask 523264   ;;  %s178_s25 = scalar_lea.vmem [#allocation7], %s886_s6 }
  0x2f   : > { %629 = vset.pattern.permute.xlu2 %v769_v0  ;;  %269 = vmatpush.msra.mxu0 %v197_v1  ;;  %v182_v6 = vld [vmem:[#allocation5 + $0x18] sm:$0xff]  ;;  %v183_v7 = vld [vmem:[#allocation5 + $0x20] sm:$0xff]  ;;  %v180_v8 = vld [vmem:[#allocation5 + $0x8] sm:$0xff]  ;;  %s449_s8 = sshll.u32 %s178_s25, 4  ;;  %s451_s17 = sshll.u32 %s447_s24, 4  ;;  %s450_s8 = int_to_ptr.vmem [resolvable:$true] %s449_s8  ;;  %s452_s17 = int_to_ptr.hbm [resolvable:$true] %s451_s17 }
  0x30   : > { %555 = vmatpush.msra.mxu2 %v197_v1  ;;  %225 = vperm.xlu1 %628, %v184_v2   ;;  %v185_v9 = vld [vmem:[#allocation5 + $0x30] sm:$0xff]  ;;  %v906_v19 = vld [vmem:[#allocation5 + $0x68] sm:$0xff]  ;;  %v190_v32 = vld [vmem:[#allocation5 + $0x58] sm:$0xff]  ;;  %s439_s18 = scalar_lea.sflag [#allocation4], %s886_s6  ;;  %s707_s19 = sshra.s32 %s452_s17, 4  ;;  %s708_s19 = int_to_ptr.hbm [resolvable:$true] %s707_s19 }
  0x31   : > { %235 = vperm.xlu0 %627, %v186_v5   ;;  %270 = vmatpush.msra.mxu0 %v196_v3  ;;  %v181_v10 = vld [vmem:[#allocation5 + $0x10] sm:$0xff]  ;;  %v194_v33 = vld [vmem:[#allocation5 + $0x78] sm:$0xff]  ;;  %v188_v36 = vld [vmem:[#allocation5 + $0x48] sm:$0xff]  ;;  %s709_s22 = scalar_lea.hbm %s708_s19, 1  ;;  %s713_s13 = scalar_lea.hbm %s955_s2, 2 }
  0x32   : > { %556 = vmatpush.msra.mxu2 %v196_v3  ;;  %536 = vmatmul.msk.f32.vlgmr.msra.gmra.mxu0 %vm238_vm0, %v179_v4  ;;  %v193_v25 = vld [vmem:[#allocation5 + $0x70] sm:$0xff]  ;;  %v191_v47 = vld [vmem:[#allocation5 + $0x60] sm:$0xff]  ;;  %p710_p1 = scmp.ne.s32.totalorder %s708_s19, %s709_s22  ;;  %p714_p11 = scmp.lt.s32.totalorder %s708_s19, %s955_s2 }
  0x33   : > { %541 = vmatmul.msk.f32.vlgmr.msra.gmra.mxu2 %vm238_vm0, %v184_v2  ;;  %215 = vperm.xlu2 %629, %v182_v6   ;;  %v187_v48 = vld [vmem:[#allocation5 + $0x40] sm:$0xff]  ;;  %v189_v51 = vld [vmem:[#allocation5 + $0x50] sm:$0xff]  ;;  %p715_p9 = scmp.lt.s32.totalorder %s713_s13, %s709_s22 }
  0x34   : > { %v195_v52 = vld [vmem:[#allocation5 + $0x80] sm:$0xff]  ;;  %p711_p4 = pnand %p710_p1, %p856_p7 }
  0x35   : > { %p716_p2 = por %p715_p9, %p714_p11 }
  0x36   : > { %p712_p8 = pneg %p711_p4 }
  0x38   : > { %220 = vperm.xlu1 %628, %v183_v7   ;;  %p717_p10 = pnand %p716_p2, %p712_p8 }
  0x39   : > { %230 = vperm.xlu0 %627, %v185_v9  }
  0x3a   : > { %537 = vmatmul.msk.f32.gmra.mxu0 %vm238_vm0, %v180_v8 }
  0x3b   : > { %542 = vmatmul.msk.f32.gmra.mxu2 %vm238_vm0, %v185_v9  ;;  %210 = vperm.xlu2 %629, %v181_v10  }
  0x40   : > { %200 = vperm.xlu1 %628, %v179_v4  }
  0x41   : > { %205 = vperm.xlu0 %627, %v180_v8  }
  0x42   : > { %538 = vmatmul.msk.f32.gmra.mxu0 %vm238_vm0, %v181_v10 }
  0x43   : > { %543 = vmatmul.msk.f32.gmra.mxu2 %vm238_vm0, %v186_v5  ;;  %630 = vset.pattern.permute.xlu2 %v770_v24 }
  0x44   : > { %341 = vperm.xlu2 %630, %v194_v33  }
  0x48   : > { %632 = vset.pattern.permute.xlu1 %v770_v24 }
  0x49   : > { %631 = vset.pattern.permute.xlu0 %v770_v24  ;;  %331 = vperm.xlu1 %632, %v906_v19  }
  0x4a   : > { %539 = vmatmul.msk.f32.gmra.mxu0 %vm238_vm0, %v182_v6  ;;  %336 = vperm.xlu0 %631, %v193_v25  }
  0x4c   : > { %326 = vperm.xlu2 %630, %v191_v47  }
  0x51   : > { %321 = vperm.xlu1 %632, %v190_v32  }
  0x52   : > { %540 = vmatmul.msk.f32.gmra.mxu0 %vm238_vm0, %v183_v7  ;;  %311 = vperm.xlu0 %631, %v188_v36  }
  0x54   : > { %316 = vperm.xlu2 %630, %v189_v51  }
  0x59   : > { %306 = vperm.xlu1 %632, %v187_v48  }
  0x5c   : > { %412 = vperm.xlu2 %630, %v195_v52  }
  0x8d   : > { %v216_v18 = vpop.permute.xlu2 %215 }
  0x95   : > { %v211_v34 = vpop.permute.xlu2 %210 }
  0x9e   : > { %v342_v57 = vpop.permute.xlu2 %341 }
  0xa2   : > { %v226_v16 = vpop.permute.xlu1 %225 }
  0xa3   : > { %v236_v14 = vpop.permute.xlu0 %235 }
  0xa6   : > { %v327_v62 = vpop.permute.xlu2 %326 }
  0xaa   : > { %v221_v29 = vpop.permute.xlu1 %220 }
  0xab   : > { %v231_v20 = vpop.permute.xlu0 %230 }
  0xae   : > { %v317_v10 = vpop.permute.xlu2 %316 }
  0xaf   : > { %v272_v11 = vpop.f32.mrf.mxu0 }
  0xb2   : > { %v201_v42 = vpop.permute.xlu1 %200 }
  0xb3   : > { %v206_v39 = vpop.permute.xlu0 %205  ;;  %v273_v45 = vadd.f32 %v272_v11, %v201_v42 }
  0xb5   : > { %v296_v50 = vmax.f32 %v273_v45, 0.0 }
  0xb6   : > { %v287_v12 = vpop.f32.mrf.mxu2 }
  0xb7   : > { %v275_v13 = vpop.f32.mrf.mxu0  ;;  %v288_v27 = vadd.f32 %v287_v12, %v226_v16 }
  0xb8   : > { %v276_v43 = vadd.f32 %v275_v13, %v206_v39 }
  0xb9   : > { %v301_v31 = vmax.f32 %v288_v27, 0.0 }
  0xba   : > { %v297_v49 = vmax.f32 %v276_v43, 0.0 }
  0xbb   : > { %v332_v58 = vpop.permute.xlu1 %331 }
  0xbc   : > { %v337_v61 = vpop.permute.xlu0 %336 }
  0xbe   : > { %v290_v15 = vpop.f32.mrf.mxu2 }
  0xbf   : > { %v278_v17 = vpop.f32.mrf.mxu0  ;;  %v291_v22 = vadd.f32 %v290_v15, %v231_v20 }
  0xc0   : > { %v279_v40 = vadd.f32 %v278_v17, %v211_v34 }
  0xc1   : > { %v302_v30 = vmax.f32 %v291_v22, 0.0 }
  0xc2   : > { %v298_v46 = vmax.f32 %v279_v40, 0.0 }
  0xc3   : > { %v322_v63 = vpop.permute.xlu1 %321 }
  0xc4   : > { %v312_v11 = vpop.permute.xlu0 %311 }
  0xc6   : > { %v293_v21 = vpop.f32.mrf.mxu2 }
  0xc7   : > { %v294_v23 = vadd.f32 %v293_v21, %v236_v14  ;;  %v281_v26 = vpop.f32.mrf.mxu0  ;;  %v413_v21 = vpop.permute.xlu2 %412 }
  0xc8   : > { %v282_v37 = vadd.f32 %v281_v26, %v216_v18 }
  0xc9   : > { %v303_v28 = vmax.f32 %v294_v23, 0.0 }
  0xca   : > { %v299_v44 = vmax.f32 %v282_v37, 0.0 }
  0xcb   : > { %369 = vmatpush.msra.mxu1 %v303_v28  ;;  %557 = vmatpush.msra.mxu3 %v303_v28  ;;  %v307_v14 = vpop.permute.xlu1 %306 }
  0xcd   : > { %370 = vmatpush.msra.mxu1 %v302_v30  ;;  %558 = vmatpush.msra.mxu3 %v302_v30 }
  0xcf   : > { %371 = vmatpush.msra.mxu1 %v301_v31  ;;  %559 = vmatpush.msra.mxu3 %v301_v31  ;;  %v284_v35 = vpop.f32.mrf.mxu0 }
  0xd0   : > { %v285_v38 = vadd.f32 %v284_v35, %v221_v29 }
  0xd2   : > { %v300_v41 = vmax.f32 %v285_v38, 0.0 }
  0xd4   : > { %372 = vmatpush.msra.mxu1 %v300_v41  ;;  %560 = vmatpush.msra.mxu3 %v300_v41 }
  0xd6   : > { %373 = vmatpush.msra.mxu1 %v299_v44  ;;  %561 = vmatpush.msra.mxu3 %v299_v44 }
  0xd8   : > { %374 = vmatpush.msra.mxu1 %v298_v46  ;;  %562 = vmatpush.msra.mxu3 %v298_v46 }
  0xda   : > { %375 = vmatpush.msra.mxu1 %v297_v49  ;;  %563 = vmatpush.msra.mxu3 %v297_v49 }
  0xdc   : > { %376 = vmatpush.msra.mxu1 %v296_v50  ;;  %564 = vmatpush.msra.mxu3 %v296_v50 }
  0xdd   : > { %548 = vmatmul.msk.f32.vlgmr.msra.gmra.mxu3 %vm344_vm1, %v191_v47  ;;  %544 = vmatmul.msk.f32.vlgmr.msra.gmra.mxu1 %vm344_vm1, %v187_v48 }
  0xe5   : > { %549 = vmatmul.msk.f32.gmra.mxu3 %vm344_vm1, %v906_v19  ;;  %545 = vmatmul.msk.f32.gmra.mxu1 %vm344_vm1, %v188_v36 }
  0xed   : > { %550 = vmatmul.msk.f32.gmra.mxu3 %vm344_vm1, %v193_v25  ;;  %546 = vmatmul.msk.f32.gmra.mxu1 %vm344_vm1, %v189_v51 }
  0xf5   : > { %551 = vmatmul.msk.f32.gmra.mxu3 %vm344_vm1, %v194_v33  ;;  %547 = vmatmul.msk.f32.gmra.mxu1 %vm344_vm1, %v190_v32 }
 0x15a   : > { %v378_v53 = vpop.f32.mrf.mxu1 }
 0x15b   : > { %v379_v17 = vadd.f32 %v378_v53, %v307_v14 }
 0x15d   : > { %v402_v20 = vmax.f32 %v379_v17, 0.0 }
 0x160   : > { %v390_v54 = vpop.f32.mrf.mxu3 }
 0x161   : > { %v391_v6 = vadd.f32 %v390_v54, %v327_v62 }
 0x162   : > { %v381_v56 = vpop.f32.mrf.mxu1 }
 0x163   : > { %v406_v12 = vmax.f32 %v391_v6, 0.0  ;;  %v382_v15 = vadd.f32 %v381_v56, %v312_v11 }
 0x165   : > { %v403_v19 = vmax.f32 %v382_v15, 0.0 }
 0x168   : > { %v393_v55 = vpop.f32.mrf.mxu3 }
 0x169   : > { %v394_v3 = vadd.f32 %v393_v55, %v332_v58 }
 0x16a   : > { %v384_v60 = vpop.f32.mrf.mxu1 }
 0x16b   : > { %v407_v8 = vmax.f32 %v394_v3, 0.0  ;;  %v385_v13 = vadd.f32 %v384_v60, %v317_v10 }
 0x16d   : > { %v404_v18 = vmax.f32 %v385_v13, 0.0 }
 0x170   : > { %v396_v59 = vpop.f32.mrf.mxu3 }
 0x171   : > { %v397_v1 = vadd.f32 %v396_v59, %v337_v61 }
 0x172   : > { %v387_v5 = vpop.f32.mrf.mxu1 }
 0x173   : > { %v408_v7 = vmax.f32 %v397_v1, 0.0  ;;  %v388_v9 = vadd.f32 %v387_v5, %v322_v63 }
 0x175   : > { %v405_v16 = vmax.f32 %v388_v9, 0.0 }
 0x178   : > { %v399_v0 = vpop.f32.mrf.mxu3 }
 0x179   : > { %v400_v2 = vadd.f32 %v399_v0, %v342_v57 }
 0x17b   : > { %v409_v4 = vmax.f32 %v400_v2, 0.0 }
 0x17d   : > { %425 = vmatpush.msrb.mxu2 %v409_v4 }
 0x17f   : > { %426 = vmatpush.msrb.mxu2 %v408_v7 }
 0x181   : > { %427 = vmatpush.msrb.mxu2 %v407_v8 }
 0x183   : > { %428 = vmatpush.msrb.mxu2 %v406_v12 }
 0x185   : > { %429 = vmatpush.msrb.mxu2 %v405_v16 }
 0x187   : > { %430 = vmatpush.msrb.mxu2 %v404_v18 }
 0x189   : > { %431 = vmatpush.msrb.mxu2 %v403_v19 }
 0x18b   : > { %432 = vmatpush.msrb.mxu2 %v402_v20 }
 0x18c   : > { %552 = vmatmul.msk.f32.vlgmr.msrb.gmra.mxu2 %vm344_vm1, %v195_v52 }
 0x20f   : > { %v434_v22 = vpop.f32.mrf.mxu2 }
 0x210   : > { %v435_v23 = vadd.f32 %v434_v22, %v413_v21 }
 0x212   : > { %437 = vst [vmem:[%s178_s25] sm:$0x1] %v435_v23 }
 0x213   : > { %720 = shalt.err (!%p717_p10)
}
 0x214   : > { %571 = dma.vmem_to_hbm [thread:$0]  (%p856_p7), %s450_s8, 16, %s452_s17, %s439_s18  }
 0x215 PF: > { %s463_s5 = sand.u32 1, %s751_s9   ;;  %p961_p12 = scmp.ge.s32.totalorder %s763_s12, 2 }
 0x216   : > { %s464_s30 = scalar_lea.sflag [#allocation4], %s463_s5 }
 0x217   : > { %p582_p13 = pnand %p961_p12, %p821_p6 }
 0x219   : > { %p583_p0 = pneg %p582_p13 }
 0x21b   : > { %746 = dma.done.wait (%p583_p0), %s464_s30, 16  }
 0x21c   : > { %748 = vsyncadd (%p583_p0), %s464_s30, 4294967280  ;;  %p16_p3 = scmp.ge.s32.totalorder %s839_s23, 4   ;;  %s962_s9 = smov %s755_s10 }
 0x21d   : > { %s963_s10 = smov %s759_s11  ;;  %s964_s11 = smov %s852_s28 }
 0x21e   : > { %s965_s12 = smov %s839_s23  ;;  %18 = sbr.rel (!%p16_p3) target bundleno = 6 (0x6), region = 77 }
 0x223   :  { %469 = vsyncpa [#allocation3], 1 }
 0x224   :  { %471 = vsyncpa [#allocation3 + $0x1], 1 }
 0x225   :  { %472 = vsyncpa [#allocation6], 1 }
 0x226   :  { %473 = vsyncpa [#allocation4], 1 }
 0x227   :  { %475 = vsyncpa [#allocation4 + $0x1], 1 }

</bundles_post_ra>
